<compile_context>
chip_gen: v7x
topology: tpu7x:2x2x1
jax: 0.10.0
libtpu: 0.0.40
codegen_flags: <defaults>
</compile_context>

<pallas_src>
import jax
import jax.numpy as jnp
from jax.experimental import pallas as pl
from jax.experimental.pallas import tpu as pltpu

SMOOTH = 1e-6  # module default


def _pad_hw(x):
    """Zero-pad the last two dims of (Bt, H, W) by 1 on each side, in VMEM."""
    Bt, H, W = x.shape
    zc = jnp.zeros((Bt, H, 1), jnp.float32)
    x = jnp.concatenate([zc, x, zc], axis=2)             # (Bt, H, W + 2)
    zr = jnp.zeros((Bt, 1, W + 2), jnp.float32)
    return jnp.concatenate([zr, x, zr], axis=1)          # (Bt, H + 2, W + 2)


def _sobel_mag(x):
    """Sobel gradient magnitude of (Bt, H, W) planes with zero padding.

    PyTorch conv2d is cross-correlation with
      gx kernel a = [[1,0,-1],[2,0,-2],[1,0,-1]]
      gy kernel b = [[1,2,1],[0,0,0],[-1,-2,-1]]
    Computed in separable form: vertical smooth s and vertical diff d, then
    horizontal difference / smooth.
    """
    Bt, H, W = x.shape
    p = _pad_hw(x)                                       # (Bt, H+2, W+2)
    top = p[:, 0:H, :]
    mid = p[:, 1:H + 1, :]
    bot = p[:, 2:H + 2, :]
    s = top + 2.0 * mid + bot                            # vertical smooth
    d = top - bot                                        # vertical diff
    gx = s[:, :, 0:W] - s[:, :, 2:W + 2]
    gy = d[:, :, 0:W] + 2.0 * d[:, :, 1:W + 1] + d[:, :, 2:W + 2]
    return jnp.sqrt(gx * gx + gy * gy + SMOOTH)


def _boundary_kernel(probs_ref, labels_ref, out_ref):
    # probs_ref / labels_ref: (Bt, 1, H, W) unpadded planes of one class.
    # out_ref: (1, 1, 1, 1) per-(class, batch-block) partial sum of squares.
    g_gt = _sobel_mag(probs_ref[:, 0])       # torch "G_gt"     (from probs)
    g_result = _sobel_mag(labels_ref[:, 0])  # torch "G_result" (from labels)
    diff = g_result - g_gt
    out_ref[...] = jnp.full((1, 1, 1, 1), jnp.sum(diff * diff),
                            dtype=jnp.float32)


def _pick_batch_tile(B, H, W, budget_bytes=1 << 20):
    """Largest divisor of B whose f32 plane-block stays under ~1 MiB."""
    plane_bytes = max(H * W * 4, 1)
    max_bt = max(1, budget_bytes // plane_bytes)
    bt = 1
    for d in range(1, B + 1):
        if B % d == 0 and d <= max_bt:
            bt = d
    return bt


def boundary_loss(probs, labels):
    """probs, labels: (B, C, H, W) float32. Returns scalar boundary loss."""
    probs = probs.astype(jnp.float32)
    labels = labels.astype(jnp.float32)
    B, C, H, W = probs.shape
    assert C >= 2, "loss is summed over classes 1..C-1"

    Bt = _pick_batch_tile(B, H, W)
    nb = B // Bt

    # Block covers Bt batch planes of one class; index_map skips class 0.
    in_spec = pl.BlockSpec((Bt, 1, H, W), lambda ci, bi: (bi, ci + 1, 0, 0))

    partial = pl.pallas_call(
        _boundary_kernel,
        out_shape=jax.ShapeDtypeStruct((C - 1, nb, 1, 1), jnp.float32),
        grid_spec=pltpu.PrefetchScalarGridSpec(
            num_scalar_prefetch=0,
            grid=(C - 1, nb),
            in_specs=[in_spec, in_spec],
            out_specs=pl.BlockSpec((1, 1, 1, 1), lambda ci, bi: (ci, bi, 0, 0)),
        ),
        compiler_params=pltpu.CompilerParams(
            dimension_semantics=("parallel", "parallel")),
    )(probs, labels)

    # Per-class MSE means share the same divisor B*H*W, so divide once.
    return jnp.sum(partial) * (1.0 / float(B * H * W))


def _reference(probs, labels):
    """Pure-JAX reference mirroring the PyTorch module."""
    B, C, H, W = probs.shape
    pp = jnp.pad(probs, ((0, 0), (0, 0), (1, 1), (1, 1)))
    lp = jnp.pad(labels, ((0, 0), (0, 0), (1, 1), (1, 1)))

    def mag(x):  # x: (B, H+2, W+2)
        gx = ((x[:, 0:H, 0:W] - x[:, 0:H, 2:W + 2])
              + 2.0 * (x[:, 1:H + 1, 0:W] - x[:, 1:H + 1, 2:W + 2])
              + (x[:, 2:H + 2, 0:W] - x[:, 2:H + 2, 2:W + 2]))
        gy = ((x[:, 0:H, 0:W] + 2.0 * x[:, 0:H, 1:W + 1] + x[:, 0:H, 2:W + 2])
              - (x[:, 2:H + 2, 0:W] + 2.0 * x[:, 2:H + 2, 1:W + 1]
                 + x[:, 2:H + 2, 2:W + 2]))
        return jnp.sqrt(gx * gx + gy * gy + SMOOTH)

    total = 0.0
    for i in range(1, C):
        g_gt = mag(pp[:, i])
        g_res = mag(lp[:, i])
        total = total + jnp.mean((g_res - g_gt) ** 2)
    return total


if __name__ == "__main__":
    key = jax.random.PRNGKey(0)
    k1, k2 = jax.random.split(key)
    B, C, H, W = 2, 4, 16, 16

    # probs: softmax over the class dim; labels: one-hot over the class dim.
    logits = jax.random.normal(k1, (B, C, H, W), dtype=jnp.float32)
    probs = jax.nn.softmax(logits, axis=1)
    label_idx = jax.random.randint(k2, (B, H, W), 0, C)
    labels = jax.nn.one_hot(label_idx, C, axis=1, dtype=jnp.float32)

    loss = boundary_loss(probs, labels)
    jax.block_until_ready(loss)

    ref = _reference(probs, labels)
    assert jnp.allclose(loss, ref, rtol=1e-4, atol=1e-5), (loss, ref)
    print("KERNEL_OK")
</pallas_src>

<mosaic_0001>
module attributes {stable_mosaic.version = 11 : i64} {
  func.func @_boundary_kernel(%arg0: i32, %arg1: i32, %arg2: memref<2x1x16x16xf32, #tpu.memory_space<vmem>>, %arg3: memref<2x1x16x16xf32, #tpu.memory_space<vmem>>, %arg4: memref<1x1x1x1xf32, #tpu.memory_space<vmem>>) attributes {dimension_semantics = [#tpu.dimension_semantics<parallel>, #tpu.dimension_semantics<parallel>], iteration_bounds = array<i64: 3, 1>, scalar_prefetch = 0 : i64, scratch_operands = 0 : i64, tpu.core_type = #tpu.core_type<tc>, window_params = [{transform_indices = @transform_0, window_bounds = array<i64: 2, 1, 16, 16>}, {transform_indices = @transform_1, window_bounds = array<i64: 2, 1, 16, 16>}, {transform_indices = @transform_2, window_bounds = array<i64: 1, 1, 1, 1>}]} {
    %c0 = arith.constant 0 : index
    %c0_0 = arith.constant 0 : index
    %c0_1 = arith.constant 0 : index
    %c0_2 = arith.constant 0 : index
    %0 = vector.load %arg2[%c0, %c0_0, %c0_1, %c0_2] : memref<2x1x16x16xf32, #tpu.memory_space<vmem>>, vector<2x1x16x16xf32>
    %1 = vector.shape_cast %0 : vector<2x1x16x16xf32> to vector<2x16x16xf32>
    %cst = arith.constant 0.000000e+00 : f32
    %2 = vector.broadcast %cst : f32 to vector<2x16x1xf32>
    %3 = tpu.concatenate %2, %1, %2 in 2 : vector<2x16x1xf32>, vector<2x16x16xf32>, vector<2x16x1xf32> -> vector<2x16x18xf32>
    %cst_3 = arith.constant 0.000000e+00 : f32
    %4 = vector.broadcast %cst_3 : f32 to vector<2x1x18xf32>
    %5 = tpu.concatenate %4, %3, %4 in 1 : vector<2x1x18xf32>, vector<2x16x18xf32>, vector<2x1x18xf32> -> vector<2x18x18xf32>
    %6 = vector.extract_strided_slice %5 {offsets = [0, 0, 0], sizes = [2, 16, 18], strides = [1, 1, 1]} : vector<2x18x18xf32> to vector<2x16x18xf32>
    %7 = vector.extract_strided_slice %5 {offsets = [0, 1, 0], sizes = [2, 16, 18], strides = [1, 1, 1]} : vector<2x18x18xf32> to vector<2x16x18xf32>
    %8 = vector.extract_strided_slice %5 {offsets = [0, 2, 0], sizes = [2, 16, 18], strides = [1, 1, 1]} : vector<2x18x18xf32> to vector<2x16x18xf32>
    %cst_4 = arith.constant 2.000000e+00 : f32
    %9 = vector.broadcast %cst_4 : f32 to vector<2x16x18xf32>
    %10 = arith.mulf %9, %7 : vector<2x16x18xf32>
    %11 = arith.addf %6, %10 : vector<2x16x18xf32>
    %12 = arith.addf %11, %8 : vector<2x16x18xf32>
    %13 = arith.subf %6, %8 : vector<2x16x18xf32>
    %14 = vector.extract_strided_slice %12 {offsets = [0, 0, 0], sizes = [2, 16, 16], strides = [1, 1, 1]} : vector<2x16x18xf32> to vector<2x16x16xf32>
    %15 = vector.extract_strided_slice %12 {offsets = [0, 0, 2], sizes = [2, 16, 16], strides = [1, 1, 1]} : vector<2x16x18xf32> to vector<2x16x16xf32>
    %16 = arith.subf %14, %15 : vector<2x16x16xf32>
    %17 = vector.extract_strided_slice %13 {offsets = [0, 0, 0], sizes = [2, 16, 16], strides = [1, 1, 1]} : vector<2x16x18xf32> to vector<2x16x16xf32>
    %18 = vector.extract_strided_slice %13 {offsets = [0, 0, 1], sizes = [2, 16, 16], strides = [1, 1, 1]} : vector<2x16x18xf32> to vector<2x16x16xf32>
    %cst_5 = arith.constant 2.000000e+00 : f32
    %19 = vector.broadcast %cst_5 : f32 to vector<2x16x16xf32>
    %20 = arith.mulf %19, %18 : vector<2x16x16xf32>
    %21 = arith.addf %17, %20 : vector<2x16x16xf32>
    %22 = vector.extract_strided_slice %13 {offsets = [0, 0, 2], sizes = [2, 16, 16], strides = [1, 1, 1]} : vector<2x16x18xf32> to vector<2x16x16xf32>
    %23 = arith.addf %21, %22 : vector<2x16x16xf32>
    %24 = arith.mulf %16, %16 : vector<2x16x16xf32>
    %25 = arith.mulf %23, %23 : vector<2x16x16xf32>
    %26 = arith.addf %24, %25 : vector<2x16x16xf32>
    %cst_6 = arith.constant 9.99999997E-7 : f32
    %27 = vector.broadcast %cst_6 : f32 to vector<2x16x16xf32>
    %28 = arith.addf %26, %27 : vector<2x16x16xf32>
    %29 = math.sqrt %28 : vector<2x16x16xf32>
    %c0_7 = arith.constant 0 : index
    %c0_8 = arith.constant 0 : index
    %c0_9 = arith.constant 0 : index
    %c0_10 = arith.constant 0 : index
    %30 = vector.load %arg3[%c0_7, %c0_8, %c0_9, %c0_10] : memref<2x1x16x16xf32, #tpu.memory_space<vmem>>, vector<2x1x16x16xf32>
    %31 = vector.shape_cast %30 : vector<2x1x16x16xf32> to vector<2x16x16xf32>
    %cst_11 = arith.constant 0.000000e+00 : f32
    %32 = vector.broadcast %cst_11 : f32 to vector<2x16x1xf32>
    %33 = tpu.concatenate %32, %31, %32 in 2 : vector<2x16x1xf32>, vector<2x16x16xf32>, vector<2x16x1xf32> -> vector<2x16x18xf32>
    %cst_12 = arith.constant 0.000000e+00 : f32
    %34 = vector.broadcast %cst_12 : f32 to vector<2x1x18xf32>
    %35 = tpu.concatenate %34, %33, %34 in 1 : vector<2x1x18xf32>, vector<2x16x18xf32>, vector<2x1x18xf32> -> vector<2x18x18xf32>
    %36 = vector.extract_strided_slice %35 {offsets = [0, 0, 0], sizes = [2, 16, 18], strides = [1, 1, 1]} : vector<2x18x18xf32> to vector<2x16x18xf32>
    %37 = vector.extract_strided_slice %35 {offsets = [0, 1, 0], sizes = [2, 16, 18], strides = [1, 1, 1]} : vector<2x18x18xf32> to vector<2x16x18xf32>
    %38 = vector.extract_strided_slice %35 {offsets = [0, 2, 0], sizes = [2, 16, 18], strides = [1, 1, 1]} : vector<2x18x18xf32> to vector<2x16x18xf32>
    %cst_13 = arith.constant 2.000000e+00 : f32
    %39 = vector.broadcast %cst_13 : f32 to vector<2x16x18xf32>
    %40 = arith.mulf %39, %37 : vector<2x16x18xf32>
    %41 = arith.addf %36, %40 : vector<2x16x18xf32>
    %42 = arith.addf %41, %38 : vector<2x16x18xf32>
    %43 = arith.subf %36, %38 : vector<2x16x18xf32>
    %44 = vector.extract_strided_slice %42 {offsets = [0, 0, 0], sizes = [2, 16, 16], strides = [1, 1, 1]} : vector<2x16x18xf32> to vector<2x16x16xf32>
    %45 = vector.extract_strided_slice %42 {offsets = [0, 0, 2], sizes = [2, 16, 16], strides = [1, 1, 1]} : vector<2x16x18xf32> to vector<2x16x16xf32>
    %46 = arith.subf %44, %45 : vector<2x16x16xf32>
    %47 = vector.extract_strided_slice %43 {offsets = [0, 0, 0], sizes = [2, 16, 16], strides = [1, 1, 1]} : vector<2x16x18xf32> to vector<2x16x16xf32>
    %48 = vector.extract_strided_slice %43 {offsets = [0, 0, 1], sizes = [2, 16, 16], strides = [1, 1, 1]} : vector<2x16x18xf32> to vector<2x16x16xf32>
    %cst_14 = arith.constant 2.000000e+00 : f32
    %49 = vector.broadcast %cst_14 : f32 to vector<2x16x16xf32>
    %50 = arith.mulf %49, %48 : vector<2x16x16xf32>
    %51 = arith.addf %47, %50 : vector<2x16x16xf32>
    %52 = vector.extract_strided_slice %43 {offsets = [0, 0, 2], sizes = [2, 16, 16], strides = [1, 1, 1]} : vector<2x16x18xf32> to vector<2x16x16xf32>
    %53 = arith.addf %51, %52 : vector<2x16x16xf32>
    %54 = arith.mulf %46, %46 : vector<2x16x16xf32>
    %55 = arith.mulf %53, %53 : vector<2x16x16xf32>
    %56 = arith.addf %54, %55 : vector<2x16x16xf32>
    %cst_15 = arith.constant 9.99999997E-7 : f32
    %57 = vector.broadcast %cst_15 : f32 to vector<2x16x16xf32>
    %58 = arith.addf %56, %57 : vector<2x16x16xf32>
    %59 = math.sqrt %58 : vector<2x16x16xf32>
    %60 = arith.subf %59, %29 : vector<2x16x16xf32>
    %61 = arith.mulf %60, %60 : vector<2x16x16xf32>
    %62 = vector.shape_cast %61 : vector<2x16x16xf32> to vector<1x2x16x16xf32>
    %cst_16 = arith.constant dense<0.000000e+00> : vector<1xf32>
    %63 = vector.multi_reduction <add>, %62, %cst_16 [1, 2, 3] : vector<1x2x16x16xf32> to vector<1xf32>
    %64 = vector.shape_cast %63 : vector<1xf32> to vector<1x1x1x1xf32>
    %65 = vector.extract %64[0, 0, 0, 0] : f32 from vector<1x1x1x1xf32>
    %66 = vector.broadcast %65 : f32 to vector<1x1x1x1xf32>
    %c0_17 = arith.constant 0 : index
    %c0_18 = arith.constant 0 : index
    %c0_19 = arith.constant 0 : index
    %c0_20 = arith.constant 0 : index
    %67 = vector.load %arg4[%c0_17, %c0_18, %c0_19, %c0_20] : memref<1x1x1x1xf32, #tpu.memory_space<vmem>>, vector<1x1x1x1xf32>
    tpu.vector_store %arg4[%c0_17, %c0_18, %c0_19, %c0_20], %66 {strides = array<i32>} : memref<1x1x1x1xf32, #tpu.memory_space<vmem>>, vector<1x1x1x1xf32>,
    return
  }
  func.func @transform_0(%arg0: i32, %arg1: i32) -> (i32, i32, i32, i32) {
    %c1_i32 = arith.constant 1 : i32
    %0 = arith.addi %arg0, %c1_i32 : i32
    %c0_i32 = arith.constant 0 : i32
    %c0_i32_0 = arith.constant 0 : i32
    %c0_i32_1 = arith.constant 0 : i32
    return %arg1, %0, %c0_i32, %c0_i32_0 : i32, i32, i32, i32
  }
  func.func @transform_1(%arg0: i32, %arg1: i32) -> (i32, i32, i32, i32) {
    %c1_i32 = arith.constant 1 : i32
    %0 = arith.addi %arg0, %c1_i32 : i32
    %c0_i32 = arith.constant 0 : i32
    %c0_i32_0 = arith.constant 0 : i32
    %c0_i32_1 = arith.constant 0 : i32
    return %arg1, %0, %c0_i32, %c0_i32_0 : i32, i32, i32, i32
  }
  func.func @transform_2(%arg0: i32, %arg1: i32) -> (i32, i32, i32, i32) {
    %c0_i32 = arith.constant 0 : i32
    %c0_i32_0 = arith.constant 0 : i32
    %c0_i32_1 = arith.constant 0 : i32
    return %arg0, %arg1, %c0_i32, %c0_i32_0 : i32, i32, i32, i32
  }
}

</mosaic_0001>

<bundles_post_ra>
// kernel: tpu_custom_call.1
= control target key start
LH: loop header
LB: loop body
LE: loop exit
PB: predicated region body
PF: predicated region fallthrough
CT: control target
= control target key end

     0   :  { %7 = vsyncpa [#allocation3], 0  ;;  %s1452_s0 = inlined_call_operand.hbm [shape: f32[2,4,16,16], index: 0, kind: input, shape index: {}]   ;;  %s1453_s1 = inlined_call_operand.hbm [shape: f32[2,4,16,16], index: 1, kind: input, shape index: {}]   ;;  %s1454_s2 = inlined_call_operand.vmem [shape: f32[3,1,1,1], index: 2, kind: output, shape index: {}]  }
   0x1   :  { %9 = vsyncpa [#allocation3 + $0x1], 0 }
   0x2   :  { %10 = vsyncpa [#allocation5], 0 }
   0x3   :  { %12 = vsyncpa [#allocation5 + $0x1], 0  ;;  %s1061_s9 = smov 0   ;;  %s1063_s10 = smov 0  }
   0x4   :  { %s1065_s11 = smov 0   ;;  %s1067_s12 = smov 0  }
   0x5   :  { %s1069_s13 = smov 0   ;;  %s1071_s14 = smov 0  }
   0x6 LB: > { %s30_s15 = sadd.s32 1, %s1025_s13  ;;  %s855_s16 = sadd.s32 4294967295, %s1029_s14   ;;  %s1029_s14 = sphi %s1071_s14, %s18_s14   ;;  %s1025_s13 = sphi %s1069_s13, %s1461_s13   ;;  %s1021_s12 = sphi %s1067_s12, %s1460_s12   ;;  %s1017_s11 = sphi %s1065_s11, %s1459_s11   ;;  %s1013_s10 = sphi %s1063_s10, %s1458_s10   ;;  %s1009_s9 = sphi %s1061_s9, %s1457_s9  }
   0x7   : > { %p32_p0 = scmp.ge.s32.totalorder %s30_s15, 3  ;;  %p48_p1 = scmp.ne.s32.totalorder %s1017_s11, %s1013_s10 }
   0x8   : > { %p49_p2 = scmp.eq.s32.totalorder %s1029_s14, 0  ;;  %p54_p4 = scmp.ne.s32.totalorder %s1013_s10, %s1009_s9 }
   0x9   : > { %s1094_s17 = scalar_select %p32_p0, 0, %s30_s15  }
   0xa   : > { %p1096_p3 = por %p49_p2, %p48_p1  ;;  %p55_p5 = scmp.eq.s32.totalorder %s855_s16, 0 }
   0xb   : > { %s35_s19 = sadd.s32 1, %s1094_s17  ;;  %s41_s21 = sadd.s32 1, %s1017_s11 }
   0xc   : > { %s37_s20 = ssub.s32 %s30_s15, %s35_s19  ;;  %p1103_p7 = por %p55_p5, %p54_p4 }
   0xd   : > { %p39_p6 = scmp.eq.s32.totalorder %s37_s20, 0  ;;  %p858_p8 = scmp.ge.s32.totalorder %s1029_s14, 3 }
   0xf   : > { %s1108_s23 = scalar_select %p39_p6, %s1017_s11, %s41_s21  }
  0x10   : > { %132 = sbr.rel (%p858_p8) target bundleno = 50 (0x32), region = 16 }
  0x17   : > { %s1112_s24 = sand.u32 1, %s1017_s11   ;;  %s874_s25 = sshll.u32 %s1025_s13, 8 }
  0x18   : > { %s859_s26 = sshll.u32 %s1112_s24, 5  ;;  %s783_s29 = scalar_lea.hbm %s1452_s0, %s874_s25 }
  0x19   : > { %s784_s30 = scalar_lea.hbm %s783_s29, 256  ;;  %s140_s4 = scalar_lea.vmem [#allocation2], %s859_s26 }
  0x1a   : > { %s878_s3 = scalar_select %p1096_p3, [#allocation0], [#allocation10] }
  0x1b   : > { %s163_s5 = sshll.u32 %s140_s4, 4  ;;  %s1031_s7 = smov 1024   ;;  %s164_s5 = int_to_ptr.vmem [resolvable:$true] %s163_s5 }
  0x1c   : > { %s155_s6 = sld [smem:[%s878_s3]]   ;;  %s1032_s8 = smov 256  }
  0x1d   : > { %879 = sst [smem:[#allocation7]] (%p1096_p3), %s1031_s7  ;;  %s1033_s9 = smov 2  }
  0x1e   : > { %880 = sst [smem:[#allocation7 + $0x1]] (%p1096_p3), %s1032_s8  ;;  %s1034_s15 = smov 128  }
  0x1f   : > { %881 = sst [smem:[#allocation7 + $0x2]] (%p1096_p3), %s1033_s9  ;;  %s1035_s19 = smov 8  }
  0x20   : > { %882 = sst [smem:[#allocation7 + $0x3]] (%p1096_p3), %s1034_s15  ;;  %s137_s21 = scalar_lea.sflag [#allocation3], %s1112_s24 }
  0x21   : > { %883 = sst [smem:[#allocation7 + $0x4]] (%p1096_p3), %s1034_s15  ;;  %s1036_s27 = smov [#allocation6]  }
  0x22   : > { %s862_s16 = sshll.u32 %s155_s6, 26  ;;  %884 = sst [smem:[#allocation7 + $0x5]] (%p1096_p3), %s1035_s19 }
  0x23   : > { %s863_s20 = sadd.s32 134217728, %s862_s16 }
  0x24   : > { %885 = dma.general (%p1096_p3), %s784_s30, 512, %s164_s5, %s137_s21, %s1036_s27, [#allocation7], %s863_s20, 0  }
  0x25   : > { %s792_s3 = scalar_lea.hbm %s1453_s1, %s874_s25  ;;  %s190_s6 = scalar_lea.vmem [#allocation4], %s859_s26 }
  0x26   : > { %s793_s4 = scalar_lea.hbm %s792_s3, 256  ;;  %s213_s7 = sshll.u32 %s190_s6, 4  ;;  %s214_s7 = int_to_ptr.vmem [resolvable:$true] %s213_s7 }
  0x27   : > { %s886_s8 = scalar_select %p1096_p3, [#allocation0], [#allocation11] }
  0x28   : > { %s1037_s15 = smov 1024   ;;  %s1038_s30 = smov 256  }
  0x29   : > { %s205_s9 = sld [smem:[%s886_s8]]   ;;  %s1039_s5 = smov 2  }
  0x2a   : > { %887 = sst [smem:[#allocation9]] (%p1096_p3), %s1037_s15  ;;  %s1040_s16 = smov 128  }
  0x2b   : > { %888 = sst [smem:[#allocation9 + $0x1]] (%p1096_p3), %s1038_s30  ;;  %s1041_s25 = smov 8  }
  0x2c   : > { %889 = sst [smem:[#allocation9 + $0x2]] (%p1096_p3), %s1039_s5  ;;  %s187_s20 = scalar_lea.sflag [#allocation5], %s1112_s24 }
  0x2d   : > { %890 = sst [smem:[#allocation9 + $0x3]] (%p1096_p3), %s1040_s16  ;;  %s1042_s21 = smov [#allocation8]  }
  0x2e   : > { %891 = sst [smem:[#allocation9 + $0x4]] (%p1096_p3), %s1040_s16 }
  0x2f   : > { %892 = sst [smem:[#allocation9 + $0x5]] (%p1096_p3), %s1041_s25  ;;  %s867_s26 = sshll.u32 %s205_s9, 26 }
  0x30   : > { %s868_s19 = sadd.s32 134217728, %s867_s26 }
  0x31   : > { %893 = dma.general (%p1096_p3), %s793_s4, 512, %s214_s7, %s187_s20, %s1042_s21, [#allocation9], %s868_s19, 0  }
  0x32 PF: > { %p869_p9 = scmp.ge.s32.totalorder %s1029_s14, 1  ;;  %p234_p10 = scmp.lt.s32.totalorder %s1029_s14, 4 }
  0x34   : > { %p235_p11 = pnand %p869_p9, %p234_p10 }
  0x35   : > { %s240_s27 = sand.u32 (!%p235_p11), 1, %s1013_s10  }
  0x36   : > { %238 = sbr.rel (%p235_p11) target bundleno = 592 (0x250), region = 28  ;;  %s870_s28 = sshll.u32 (!%p235_p11), %s240_s27, 5 }
  0x37   : > { %s241_s29 = scalar_lea.sflag (!%p235_p11), [#allocation3], %s240_s27  ;;  %s244_s3 = scalar_lea.vmem (!%p235_p11), [#allocation2], %s870_s28 }
  0x3d   : > { %1000 = dma.done.wait (%p1103_p7), %s241_s29, 512  }
  0x3e   : > { %1002 = vsyncadd (%p1103_p7), %s241_s29, 4294966784  ;;  %s250_s18 = scalar_lea.sflag [#allocation5], %s240_s27  ;;  %s253_s24 = scalar_lea.vmem [#allocation4], %s870_s28 }
  0x3f   : > { %1004 = dma.done.wait (%p1103_p7), %s250_s18, 512  }
  0x40   : > { %1006 = vsyncadd (%p1103_p7), %s250_s18, 4294966784  ;;  %v507_v0 = vld [vmem:[%s253_s24] sm:$0xff]  ;;  %s1043_s4 = smov 1   ;;  %v508_v2 = vld [vmem:[%s253_s24 + $0x8] sm:$0xff]  ;;  %vm310_vm0 = vcmask 7168   ;;  %vm315_vm1 = vcmask 138240  }
  0x41   : > { %v290_v1 = vld [vmem:[%s244_s3] sm:$0xff]  ;;  %515 = vrot.lane.b32.xlu1 %v507_v0, %s1043_s4  ;;  %v291_v3 = vld [vmem:[%s244_s3 + $0x8] sm:$0xff]  ;;  %v293_v4 = vld [vmem:[%s244_s3 + $0x18] sm:$0xff]  ;;  %vm324_vm2 = vcmask 1040384   ;;  %vm376_vm3 = vcmask 1045504   ;;  %s1044_s22 = smov 126  }
  0x42   : > { %298 = vrot.lane.b32.xlu0 %v290_v1, %s1043_s4  ;;  %v292_v5 = vld [vmem:[%s244_s3 + $0x10] sm:$0xff]  ;;  %v510_v6 = vld [vmem:[%s253_s24 + $0x18] sm:$0xff]  ;;  %s1045_s6 = smov 127   ;;  %vm353_vm4 = vcmask 1046528   ;;  %p284_p12 = scmp.lt.s32.totalorder %s1021_s12, 2 }
  0x43   : > { %v509_v7 = vld [vmem:[%s253_s24 + $0x10] sm:$0xff] }
  0x44   : > { %s1463_s12 = smov (!%p284_p12, %s1021_s12), 2 }
  0x45   : > { %517 = vrot.lane.b32.xlu1 %v508_v2, %s1043_s4  ;;  %s289_s9 = scalar_lea.vmem %s1454_s2, %s1463_s12 }
  0x46   : > { %300 = vrot.lane.b32.xlu0 %v291_v3, %s1043_s4 }
  0x49   : > { %304 = vrot.lane.b32.xlu1 %v293_v4, %s1043_s4 }
  0x4a   : > { %302 = vrot.lane.b32.xlu0 %v292_v5, %s1043_s4 }
  0x4d   : > { %521 = vrot.lane.b32.xlu1 %v510_v6, %s1043_s4 }
  0x4e   : > { %519 = vrot.lane.b32.xlu0 %v509_v7, %s1043_s4 }
  0xb3   : > { %v516_v8 = vpop.permute.xlu1 %515 }
  0xb4   : > { %v299_v9 = vpop.permute.xlu0 %298  ;;  %v527_v15 = vsel %vm310_vm0, 0.0, %v516_v8 }
  0xb5   : > { %v311_v10 = vsel %vm310_vm0, 0.0, %v299_v9  ;;  %v531_v24 = vsel %vm315_vm1, %v527_v15, 0.0 }
  0xb6   : > { %v316_v14 = vsel %vm315_vm1, %v311_v10, 0.0  ;;  %v539_v32 = vrot.slane %v531_v24, 7 }
  0xb7   : > { %v518_v11 = vpop.permute.xlu1 %517  ;;  %v325_v21 = vrot.slane %v316_v14, 7 }
  0xb8   : > { %v301_v12 = vpop.permute.xlu0 %300  ;;  %v528_v16 = vsel %vm310_vm0, 0.0, %v518_v11  ;;  %v1197_v46 = vsel %vm324_vm2, 0.0, %v539_v32 }
  0xb9   : > { %v312_v13 = vsel %vm310_vm0, 0.0, %v301_v12  ;;  %v532_v25 = vsel %vm315_vm1, %v528_v16, 0.0  ;;  %v1186_v33 = vsel %vm324_vm2, 0.0, %v325_v21  ;;  %v589_v57 = vrot.slane %v1197_v46, 2 }
  0xba   : > { %v317_v17 = vsel %vm315_vm1, %v312_v13, 0.0  ;;  %v540_v34 = vrot.slane %v532_v25, 7  ;;  %v377_v43 = vrot.slane %v1186_v33, 2  ;;  %v341_v16 = vmul.f32 2.0, %v1186_v33 }
  0xbb   : > { %v326_v18 = vrot.slane %v317_v17, 7  ;;  %v305_v19 = vpop.permute.xlu1 %304 }
  0xbc   : > { %v303_v20 = vpop.permute.xlu0 %302  ;;  %v314_v22 = vsel %vm310_vm0, 0.0, %v305_v19  ;;  %v553_v44 = vsel %vm324_vm2, %v540_v34, 0.0  ;;  %v1206_v50 = vsel %vm324_vm2, %v539_v32, %v540_v34  ;;  %v354_v24 = vrot.slane %v341_v16, 1 }
  0xbd   : > { %v313_v23 = vsel %vm310_vm0, 0.0, %v303_v20  ;;  %v1178_v26 = vsel %vm324_vm2, %v326_v18, 0.0  ;;  %v1181_v27 = vsel %vm324_vm2, %v325_v21, %v326_v18  ;;  %v319_v28 = vsel %vm315_vm1, %v314_v22, 0.0 }
  0xbe   : > { %v318_v29 = vsel %vm315_vm1, %v313_v23, 0.0  ;;  %v380_v35 = vrot.slane %v1178_v26, 2  ;;  %v329_v36 = vrot.slane %v319_v28, 7  ;;  %v378_v42 = vrot.slane %v1181_v27, 2 }
  0xbf   : > { %v522_v30 = vpop.permute.xlu1 %521  ;;  %v328_v39 = vrot.slane %v318_v29, 7  ;;  %v592_v54 = vrot.slane %v553_v44, 2  ;;  %v590_v61 = vrot.slane %v1206_v50, 2  ;;  %v342_v14 = vmul.f32 2.0, %v1181_v27 }
  0xc0   : > { %v520_v31 = vpop.permute.xlu0 %519  ;;  %v530_v37 = vsel %vm310_vm0, 0.0, %v522_v30  ;;  %v1200_v48 = vsel %vm376_vm3, %v378_v42, %v380_v35  ;;  %v1203_v49 = vsel %vm376_vm3, %v377_v43, %v378_v42  ;;  %v340_v0 = vsel %vm324_vm2, %v329_v36, 0.0 }
  0xc1   : > { %v529_v38 = vsel %vm310_vm0, 0.0, %v520_v31  ;;  %v534_v40 = vsel %vm315_vm1, %v530_v37, 0.0  ;;  %v1209_v51 = vsel %vm324_vm2, %v328_v39, %v329_v36  ;;  %v1212_v52 = vsel %vm324_vm2, 0.0, %v328_v39 }
  0xc2   : > { %v533_v41 = vsel %vm315_vm1, %v529_v38, 0.0  ;;  %v543_v45 = vrot.slane %v534_v40, 7  ;;  %v1216_v53 = vsub.f32 %v1181_v27, %v1200_v48  ;;  %v1230_v59 = vsub.f32 %v1186_v33, %v1203_v49 }
  0xc3   : > { %v542_v47 = vrot.slane %v533_v41, 7  ;;  %v382_v60 = vrot.slane %v1212_v52, 2  ;;  %v383_v62 = vrot.slane %v1209_v51, 2  ;;  %v1240_v1 = vsel %vm376_vm3, %v589_v57, %v590_v61 }
  0xc4   : > { %449 = vrot.lane.b32.xlu0 %v1216_v53, %s1044_s22  ;;  %447 = vrot.lane.b32.xlu1 %v1230_v59, %s1044_s22  ;;  %v1243_v2 = vsel %vm376_vm3, %v590_v61, %v592_v54  ;;  %v1250_v4 = vsub.f32 %v1197_v46, %v1240_v1  ;;  %v385_v6 = vrot.slane %v340_v0, 2  ;;  %v554_v11 = vsel %vm324_vm2, %v543_v45, 0.0 }
  0xc5   : > { %v1219_v55 = vsel %vm324_vm2, %v542_v47, %v543_v45  ;;  %v1222_v56 = vsel %vm324_vm2, 0.0, %v542_v47  ;;  %v1254_v5 = vsub.f32 %v1206_v50, %v1243_v2  ;;  %v1257_v7 = vsel %vm376_vm3, %v382_v60, %v383_v62 }
  0xc6   : > { %v594_v58 = vrot.slane %v1222_v56, 2  ;;  %v595_v63 = vrot.slane %v1219_v55, 2  ;;  %v1269_v9 = vsub.f32 %v1212_v52, %v1257_v7  ;;  %v1272_v10 = vsel %vm376_vm3, %v383_v62, %v385_v6 }
  0xc7   : > { %v419_v12 = vmul.f32 2.0, %v1230_v59  ;;  %v1282_v13 = vsub.f32 %v1209_v51, %v1272_v10  ;;  %v597_v15 = vrot.slane %v554_v11, 2  ;;  %v556_v17 = vmul.f32 2.0, %v1206_v50 }
  0xc8   : > { %v1246_v3 = vsel %vm376_vm3, %v594_v58, %v595_v63  ;;  %659 = vrot.lane.b32.xlu0 %v1250_v4, %s1044_s22  ;;  %661 = vrot.lane.b32.xlu1 %v1254_v5, %s1044_s22  ;;  %v631_v18 = vmul.f32 2.0, %v1250_v4  ;;  %v420_v19 = vmul.f32 2.0, %v1216_v53  ;;  %v557_v20 = vmul.f32 2.0, %v553_v44 }
  0xc9   : > { %v1265_v8 = vsub.f32 %v1222_v56, %v1246_v3  ;;  %v343_v21 = vmul.f32 2.0, %v1178_v26  ;;  %v355_v22 = vrot.slane %v342_v14, 1  ;;  %v1294_v23 = vsel %vm376_vm3, %v595_v63, %v597_v15 }
  0xca   : > { %v344_v25 = vmul.f32 2.0, %v1212_v52  ;;  %v345_v28 = vmul.f32 2.0, %v1209_v51  ;;  %v421_v29 = vmul.f32 2.0, %v1269_v9  ;;  %v632_v30 = vmul.f32 2.0, %v1254_v5 }
  0xcb   : > { %v1304_v26 = vsub.f32 %v1219_v55, %v1294_v23  ;;  %v568_v31 = vrot.slane %v556_v17, 1  ;;  %v570_v32 = vrot.slane %v557_v20, 1  ;;  %v357_v34 = vrot.slane %v343_v21, 1 }
  0xcc   : > { %451 = vrot.lane.b32.xlu0 %v1269_v9, %s1044_s22  ;;  %663 = vrot.lane.b32.xlu1 %v1265_v8, %s1044_s22  ;;  %v356_v35 = vsel %vm353_vm4, %v354_v24, %v355_v22  ;;  %v555_v36 = vmul.f32 2.0, %v1197_v46  ;;  %v346_v37 = vmul.f32 2.0, %v340_v0  ;;  %v359_v38 = vrot.slane %v344_v25, 1 }
  0xcd   : > { %v360_v39 = vrot.slane %v345_v28, 1  ;;  %v634_v40 = vmul.f32 2.0, %v1304_v26  ;;  %v633_v41 = vmul.f32 2.0, %v1265_v8  ;;  %v368_v42 = vadd.f32 %v356_v35, %v1186_v33 }
  0xce   : > { %v558_v43 = vmul.f32 2.0, %v1222_v56  ;;  %v559_v44 = vmul.f32 2.0, %v1219_v55  ;;  %v571_v45 = vsel %vm353_vm4, %v568_v31, %v570_v32  ;;  %v358_v47 = vsel %vm353_vm4, %v355_v22, %v357_v34 }
  0xcf   : > { %v567_v54 = vrot.slane %v555_v36, 1  ;;  %v362_v57 = vrot.slane %v346_v37, 1  ;;  %v560_v58 = vmul.f32 2.0, %v554_v11  ;;  %v391_v60 = vadd.f32 %v1203_v49, %v368_v42 }
  0xd0   : > { %427 = vrot.lane.b32.xlu0 %v419_v12, %s1045_s6  ;;  %453 = vrot.lane.b32.xlu1 %v1282_v13, %s1044_s22  ;;  %v422_v61 = vmul.f32 2.0, %v1282_v13  ;;  %v582_v33 = vadd.f32 %v571_v45, %v1206_v50  ;;  %v369_v62 = vadd.f32 %v358_v47, %v1181_v27  ;;  %v572_v63 = vrot.slane %v558_v43, 1 }
  0xd1   : > { %v573_v0 = vrot.slane %v559_v44, 1  ;;  %v361_v6 = vsel %vm353_vm4, %v359_v38, %v360_v39  ;;  %v569_v12 = vsel %vm353_vm4, %v567_v54, %v568_v31  ;;  %v575_v15 = vrot.slane %v560_v58, 1 }
  0xd2   : > { %v604_v11 = vadd.f32 %v1243_v2, %v582_v33  ;;  %v392_v49 = vadd.f32 %v1200_v48, %v369_v62  ;;  %v370_v14 = vadd.f32 %v361_v6, %v1212_v52  ;;  %v581_v50 = vadd.f32 %v569_v12, %v1197_v46 }
  0xd3   : > { %v363_v27 = vsel %vm353_vm4, %v360_v39, %v362_v57  ;;  %v574_v16 = vsel %vm353_vm4, %v572_v63, %v573_v0  ;;  %v576_v46 = vsel %vm353_vm4, %v573_v0, %v575_v15  ;;  %vm727_vm2 = vcmask 130048  }
  0xd4   : > { %639 = vrot.lane.b32.xlu0 %v631_v18, %s1045_s6  ;;  %429 = vrot.lane.b32.xlu1 %v420_v19, %s1045_s6  ;;  %v1336_v17 = vadd.f32 %v1257_v7, %v370_v14  ;;  %v603_v2 = vadd.f32 %v1240_v1, %v581_v50  ;;  %v371_v48 = vadd.f32 %v363_v27, %v1209_v51 }
  0xd5   : > { %v583_v52 = vadd.f32 %v574_v16, %v1222_v56  ;;  %v584_v7 = vadd.f32 %v576_v46, %v1219_v55 }
  0xd6   : > { %v1346_v18 = vadd.f32 %v1272_v10, %v371_v48 }
  0xd7   : > { %v1349_v19 = vadd.f32 %v1246_v3, %v583_v52  ;;  %v1357_v51 = vadd.f32 %v1294_v23, %v584_v7 }
  0xd8   : > { %431 = vrot.lane.b32.xlu0 %v421_v29, %s1045_s6  ;;  %641 = vrot.lane.b32.xlu1 %v632_v30, %s1045_s6 }
  0xdc   : > { %645 = vrot.lane.b32.xlu0 %v634_v40, %s1045_s6  ;;  %643 = vrot.lane.b32.xlu1 %v633_v41, %s1045_s6 }
  0xe0   : > { %403 = vrot.lane.b32.xlu0 %v391_v60, %s1044_s22  ;;  %433 = vrot.lane.b32.xlu1 %v422_v61, %s1045_s6 }
  0xe4   : > { %617 = vrot.lane.b32.xlu0 %v604_v11, %s1044_s22  ;;  %405 = vrot.lane.b32.xlu1 %v392_v49, %s1044_s22 }
  0xe8   : > { %407 = vrot.lane.b32.xlu0 %v1336_v17, %s1044_s22  ;;  %615 = vrot.lane.b32.xlu1 %v603_v2, %s1044_s22 }
  0xec   : > { %409 = vrot.lane.b32.xlu0 %v1346_v18, %s1044_s22  ;;  %619 = vrot.lane.b32.xlu1 %v1349_v19, %s1044_s22 }
  0xf0   : > { %621 = vrot.lane.b32.xlu0 %v1357_v51, %s1044_s22  ;;  %665 = vrot.lane.b32.xlu1 %v1304_v26, %s1044_s22 }
 0x136   : > { %v450_v56 = vpop.permute.xlu0 %449  ;;  %v448_v1 = vpop.permute.xlu1 %447 }
 0x13a   : > { %v662_v3 = vpop.permute.xlu1 %661  ;;  %v660_v10 = vpop.permute.xlu0 %659 }
 0x13e   : > { %v664_v55 = vpop.permute.xlu1 %663  ;;  %v452_v20 = vpop.permute.xlu0 %451 }
 0x142   : > { %v454_v21 = vpop.permute.xlu1 %453  ;;  %v428_v22 = vpop.permute.xlu0 %427 }
 0x143   : > { %v439_v23 = vadd.f32 %v428_v22, %v1230_v59 }
 0x145   : > { %v459_v34 = vadd.f32 %v448_v1, %v439_v23 }
 0x146   : > { %v430_v24 = vpop.permute.xlu1 %429  ;;  %v640_v25 = vpop.permute.xlu0 %639 }
 0x147   : > { %v440_v32 = vadd.f32 %v430_v24, %v1216_v53  ;;  %v651_v40 = vadd.f32 %v640_v25, %v1250_v4  ;;  %v467_v41 = vmul.f32 %v459_v34, %v459_v34 }
 0x149   : > { %v460_v39 = vadd.f32 %v450_v56, %v440_v32  ;;  %v671_v58 = vadd.f32 %v660_v10, %v651_v40 }
 0x14a   : > { %v642_v28 = vpop.permute.xlu1 %641  ;;  %v432_v29 = vpop.permute.xlu0 %431 }
 0x14b   : > { %v652_v35 = vadd.f32 %v642_v28, %v1254_v5  ;;  %v441_v44 = vadd.f32 %v432_v29, %v1269_v9  ;;  %v468_v53 = vmul.f32 %v460_v39, %v460_v39  ;;  %v679_v50 = vmul.f32 %v671_v58, %v671_v58 }
 0x14d   : > { %v672_v42 = vadd.f32 %v662_v3, %v652_v35  ;;  %v461_v63 = vadd.f32 %v452_v20, %v441_v44 }
 0x14e   : > { %v644_v30 = vpop.permute.xlu1 %643  ;;  %v646_v31 = vpop.permute.xlu0 %645 }
 0x14f   : > { %v653_v5 = vadd.f32 %v644_v30, %v1265_v8  ;;  %v469_v16 = vmul.f32 %v461_v63, %v461_v63 }
 0x152   : > { %v434_v36 = vpop.permute.xlu1 %433  ;;  %v404_v37 = vpop.permute.xlu0 %403 }
 0x153   : > { %v415_v38 = vsub.f32 %v391_v60, %v404_v37  ;;  %v442_v61 = vadd.f32 %v434_v36, %v1282_v13  ;;  %v680_v60 = vmul.f32 %v672_v42, %v672_v42 }
 0x155   : > { %v463_v43 = vmul.f32 %v415_v38, %v415_v38 }
 0x156   : > { %v406_v45 = vpop.permute.xlu1 %405  ;;  %v618_v59 = vpop.permute.xlu0 %617 }
 0x157   : > { %v471_v47 = vadd.f32 %v467_v41, %v463_v43  ;;  %v416_v54 = vsub.f32 %v392_v49, %v406_v45  ;;  %v628_v57 = vsub.f32 %v604_v11, %v618_v59  ;;  %v673_v49 = vadd.f32 %v664_v55, %v653_v5 }
 0x158   : > { %v462_v11 = vadd.f32 %v454_v21, %v442_v61 }
 0x159   : > { %v1370_v33 = vadd.f32 1e-06, %v471_v47  ;;  %v464_v4 = vmul.f32 %v416_v54, %v416_v54  ;;  %v676_v62 = vmul.f32 %v628_v57, %v628_v57  ;;  %v681_v1 = vmul.f32 %v673_v49, %v673_v49 }
 0x15a   : > { %v616_v0 = vpop.permute.xlu1 %615  ;;  %v408_v6 = vpop.permute.xlu0 %407  ;;  %v470_v10 = vmul.f32 %v462_v11, %v462_v11 }
 0x15b   : > { %v472_v9 = vadd.f32 %v468_v53, %v464_v4  ;;  %v684_v12 = vadd.f32 %v680_v60, %v676_v62  ;;  %v627_v14 = vsub.f32 %v603_v2, %v616_v0  ;;  %v417_v15 = vsub.f32 %v1336_v17, %v408_v6 }
 0x15c   : > { %959 = vrsqrt.f32 %v1370_v33  ;;  %v654_v17 = vadd.f32 %v646_v31, %v1304_v26  ;;  %vm481_vm5 = vcmp.eq.f32.partialorder %v1370_v33, inf  ;;  %vm483_vm6 = vcmp.eq.f32.partialorder %v1370_v33, 0.0 }
 0x15d   : > { %v1374_v8 = vadd.f32 1e-06, %v472_v9  ;;  %v1376_v13 = vadd.f32 1e-06, %v684_v12  ;;  %v675_v27 = vmul.f32 %v627_v14, %v627_v14  ;;  %v465_v48 = vmul.f32 %v417_v15, %v417_v15 }
 0x15e   : > { %v620_v52 = vpop.permute.xlu1 %619  ;;  %v410_v46 = vpop.permute.xlu0 %409  ;;  %v484_v41 = vand.u32 2147483648, %v1370_v33 }
 0x15f   : > { %961 = vrsqrt.f32 %v1374_v8  ;;  %v683_v7 = vadd.f32 %v679_v50, %v675_v27  ;;  %v629_v2 = vsub.f32 %v1349_v19, %v620_v52  ;;  %v418_v56 = vsub.f32 %v1346_v18, %v410_v46 }
 0x160   : > { %963 = vrsqrt.f32 %v1376_v13  ;;  %v473_v3 = vadd.f32 %v469_v16, %v465_v48  ;;  %vm488_vm7 = vcmp.eq.f32.partialorder %v1374_v8, inf  ;;  %vm700_vm8 = vcmp.eq.f32.partialorder %v1376_v13, inf }
 0x161   : > { %v687_v55 = vadd.f32 1e-06, %v683_v7  ;;  %v677_v20 = vmul.f32 %v629_v2, %v629_v2  ;;  %v466_v21 = vmul.f32 %v418_v56, %v418_v56  ;;  %vm490_vm9 = vcmp.eq.f32.partialorder %v1374_v8, 0.0 }
 0x162   : > { %v1383_v22 = vadd.f32 1e-06, %v473_v3  ;;  %v666_v24 = vpop.permute.xlu1 %665  ;;  %v622_v25 = vpop.permute.xlu0 %621  ;;  %v491_v59 = vand.u32 2147483648, %v1374_v8  ;;  %v703_v54 = vand.u32 2147483648, %v1376_v13  ;;  %vm702_vm11 = vcmp.eq.f32.partialorder %v1376_v13, 0.0 }
 0x163   : > { %965 = vrsqrt.f32 %v687_v55  ;;  %v685_v28 = vadd.f32 %v681_v1, %v677_v20  ;;  %v474_v29 = vadd.f32 %v470_v10, %v466_v21  ;;  %v674_v19 = vadd.f32 %v666_v24, %v654_v17 }
 0x164   : > { %967 = vrsqrt.f32 %v1383_v22  ;;  %v630_v18 = vsub.f32 %v1357_v51, %v622_v25  ;;  %vm693_vm10 = vcmp.eq.f32.partialorder %v687_v55, inf  ;;  %v696_v53 = vand.u32 2147483648, %v687_v55 }
 0x165   : > { %v689_v26 = vadd.f32 1e-06, %v685_v28  ;;  %v1387_v23 = vadd.f32 1e-06, %v474_v29  ;;  %v682_v30 = vmul.f32 %v674_v19, %v674_v19  ;;  %vm695_vm12 = vcmp.eq.f32.partialorder %v687_v55, 0.0 }
 0x166   : > { %v678_v31 = vmul.f32 %v630_v18, %v630_v18  ;;  %v960_v32 = vpop.eup %959  ;;  %vm495_vm13 = vcmp.eq.f32.partialorder %v1383_v22, inf  ;;  %v498_v6 = vand.u32 2147483648, %v1383_v22  ;;  %vm497_vm15 = vcmp.eq.f32.partialorder %v1383_v22, 0.0 }
 0x167   : > { %969 = vrsqrt.f32 %v689_v26  ;;  %v480_v38 = vmul.f32 %v960_v32, %v1370_v33  ;;  %vm707_vm14 = vcmp.eq.f32.partialorder %v689_v26, inf  ;;  %v710_v50 = vand.u32 2147483648, %v689_v26 }
 0x168   : > { %971 = vrsqrt.f32 %v1387_v23  ;;  %v686_v34 = vadd.f32 %v682_v30, %v678_v31  ;;  %vm709_vm0 = vcmp.eq.f32.partialorder %v689_v26, 0.0  ;;  %vm502_vm1 = vcmp.eq.f32.partialorder %v1387_v23, inf }
 0x169   : > { %v962_v35 = vpop.eup %961  ;;  %v482_v45 = vsel %vm481_vm5, %v1370_v33, %v480_v38  ;;  %v505_v46 = vand.u32 2147483648, %v1387_v23  ;;  %vm504_vm4 = vcmp.eq.f32.partialorder %v1387_v23, 0.0 }
 0x16a   : > { %v964_v36 = vpop.eup %963  ;;  %v1390_v37 = vadd.f32 1e-06, %v686_v34  ;;  %v487_v39 = vmul.f32 %v962_v35, %v1374_v8  ;;  %v485_v4 = vsel %vm483_vm6, %v484_v41, %v482_v45  ;;  %vm745_vm6 = vcmask 0  }
 0x16b   : > { %v699_v51 = vmul.f32 %v964_v36, %v1376_v13 }
 0x16c   : > { %973 = vrsqrt.f32 %v1390_v37  ;;  %v489_v42 = vsel %vm488_vm7, %v1374_v8, %v487_v39  ;;  %vm714_vm3 = vcmp.eq.f32.partialorder %v1390_v37, inf  ;;  %v717_v7 = vand.u32 2147483648, %v1390_v37 }
 0x16d   : > { %v966_v40 = vpop.eup %965  ;;  %v701_v43 = vsel %vm700_vm8, %v1376_v13, %v699_v51  ;;  %v492_v58 = vsel %vm490_vm9, %v491_v59, %v489_v42  ;;  %vm716_vm5 = vcmp.eq.f32.partialorder %v1390_v37, 0.0 }
 0x16e   : > { %v968_v44 = vpop.eup %967  ;;  %v692_v47 = vmul.f32 %v966_v40, %v687_v55  ;;  %v704_v61 = vsel %vm702_vm11, %v703_v54, %v701_v43 }
 0x16f   : > { %v494_v57 = vmul.f32 %v968_v44, %v1383_v22  ;;  %v720_v49 = vsub.f32 %v704_v61, %v492_v58 }
 0x170   : > { %v694_v5 = vsel %vm693_vm10, %v687_v55, %v692_v47 }
 0x171   : > { %v970_v60 = vpop.eup %969  ;;  %v697_v62 = vsel %vm695_vm12, %v696_v53, %v694_v5  ;;  %v496_v0 = vsel %vm495_vm13, %v1383_v22, %v494_v57  ;;  %v724_v52 = vmul.f32 %v720_v49, %v720_v49 }
 0x172   : > { %v972_v63 = vpop.eup %971  ;;  %v706_v9 = vmul.f32 %v970_v60, %v689_v26  ;;  %v719_v12 = vsub.f32 %v697_v62, %v485_v4  ;;  %v499_v33 = vsel %vm497_vm15, %v498_v6, %v496_v0 }
 0x173   : > { %v501_v14 = vmul.f32 %v972_v63, %v1387_v23  ;;  %v729_v55 = vsel %vm727_vm2, %v724_v52, 0.0 }
 0x174   : > { %v708_v11 = vsel %vm707_vm14, %v689_v26, %v706_v9  ;;  %v723_v8 = vmul.f32 %v719_v12, %v719_v12 }
 0x175   : > { %v711_v15 = vsel %vm709_vm0, %v710_v50, %v708_v11  ;;  %v503_v16 = vsel %vm502_vm1, %v1387_v23, %v501_v14 }
 0x176   : > { %v974_v13 = vpop.eup %973  ;;  %v721_v27 = vsub.f32 %v711_v15, %v499_v33  ;;  %v728_v1 = vsel %vm727_vm2, %v723_v8, 0.0  ;;  %v506_v17 = vsel %vm504_vm4, %v505_v46, %v503_v16 }
 0x177   : > { %v713_v48 = vmul.f32 %v974_v13, %v1390_v37  ;;  %v730_v21 = vadd.f32 %v729_v55, %v728_v1 }
 0x178   : > { %v725_v2 = vmul.f32 %v721_v27, %v721_v27 }
 0x179   : > { %v715_v56 = vsel %vm714_vm3, %v1390_v37, %v713_v48 }
 0x17a   : > { %v718_v3 = vsel %vm716_vm5, %v717_v7, %v715_v56  ;;  %v731_v20 = vsel %vm727_vm2, %v725_v2, 0.0 }
 0x17b   : > { %v722_v10 = vsub.f32 %v718_v3, %v506_v17  ;;  %v732_v24 = vadd.f32 %v731_v20, %v730_v21 }
 0x17d   : > { %v726_v22 = vmul.f32 %v722_v10, %v722_v10 }
 0x17f   : > { %v733_v25 = vsel %vm727_vm2, %v726_v22, 0.0 }
 0x180   : > { %v734_v28 = vadd.f32 %v733_v25, %v732_v24 }
 0x182   : > { %735 = vadd.xlane.f32.xlu0 %v734_v28 }
 0x20f   : > { %v736_v29 = vpop.xlane.xlu0 %735 }
 0x210   : > { %v737_v19 = vrot.slane %v736_v29, 4 }
 0x212   : > { %v738_v18 = vadd.f32 %v737_v19, %v736_v29 }
 0x214   : > { %v739_v26 = vrot.slane %v738_v18, 2 }
 0x216   : > { %v740_v23 = vadd.f32 %v739_v26, %v738_v18 }
 0x218   : > { %v741_v30 = vrot.slane %v740_v23, 1 }
 0x21a   : > { %v742_v31 = vadd.f32 %v741_v30, %v740_v23 }
 0x21c   : > { %876 = vpush %v742_v31 }
 0x24d   : > { %s877_s15 = spop %876 }
 0x24e   : > { %v744_v32 = vstv %s877_s15 }
 0x24f   : > { %746 = vst.msk [vmem:[%s289_s9] sm:$0x1] %vm745_vm6, %v744_v32 }
 0x250 PF: > { %s18_s14 = sadd.s32 1, %s1029_s14   ;;  %s1457_s9 = smov %s1013_s10 }
 0x251   : > { %p15_p13 = scmp.ge.s32.totalorder %s18_s14, 5   ;;  %s1458_s10 = smov %s1017_s11 }
 0x252   : > { %s1459_s11 = smov %s1108_s23  ;;  %s1460_s12 = smov %s1025_s13 }
 0x253   : > { %s1461_s13 = smov %s1094_s17  ;;  %17 = sbr.rel (!%p15_p13) target bundleno = 6 (0x6), region = 91 }
 0x25a   :  { %770 = vsyncpa [#allocation3], 1 }
 0x25b   :  { %772 = vsyncpa [#allocation3 + $0x1], 1 }
 0x25c   :  { %773 = vsyncpa [#allocation5], 1 }
 0x25d   :  { %775 = vsyncpa [#allocation5 + $0x1], 1 }

</bundles_post_ra>
